<compile_context>
chip_gen: v6e
topology: v6e:2x2x1
jax: 0.10.0
libtpu: 0.0.40
codegen_flags: <defaults>
</compile_context>

<pallas_src>
import jax
import jax.numpy as jnp
from jax.experimental import pallas as pl
from jax.experimental.pallas import tpu as pltpu

D_IN, D_H1, D_H2 = 512, 512, 256


def _round_up(n, m):
    return ((n + m - 1) // m) * m


def mlp_kernel(x_ref, w1_ref, b1_ref, w2_ref, b2_ref, w3_ref, b3_ref, o_ref):
    # In-kernel bf16 cast of the f32 x tile (avoids a standalone XLA cast/pad pass in HBM).
    x = x_ref[...].astype(jnp.bfloat16)
    # fc1 + relu   (bf16 operands, f32 MXU accumulation)
    h1 = jnp.dot(x, w1_ref[...], preferred_element_type=jnp.float32) + b1_ref[...]
    h1 = jnp.maximum(h1, 0.0).astype(jnp.bfloat16)
    # fc2 + relu
    h2 = jnp.dot(h1, w2_ref[...], preferred_element_type=jnp.float32) + b2_ref[...]
    h2 = jnp.maximum(h2, 0.0).astype(jnp.bfloat16)
    # fc3: (1, 256) contracted with (TB, 256) on the last dims -> (1, TB); batch lands on the
    # lane axis so the writeback is lane-dense (no 128x-padded partial stores).
    z3 = jax.lax.dot_general(
        w3_ref[...], h2,
        dimension_numbers=(((1,), (1,)), ((), ())),
        preferred_element_type=jnp.float32,
    ) + b3_ref[0, 0]
    o_ref[...] = jax.nn.sigmoid(z3)


def simple_nn_forward(x, params, *, tile_b=None):
    """x: [B, 512] float32. Returns [B, 1] float32 (matches PyTorch SimpleNN.forward)."""
    w1, b1, w2, b2, w3, b3 = params
    B = x.shape[0]

    # Batch-tile policy:
    #  * multiple of 16 (bf16 sublane packing)
    #  * >= 2 grid steps once B > 16 so v7x's two TensorCores both get work
    #  * cap at 1024 rows: big enough to amortize per-step overhead on v6e, small enough
    #    that the f32 x tile + f32 intermediates stay a few MiB (fits every generation).
    if tile_b is None:
        tile_b = 16 if B <= 16 else min(1024, _round_up(pl.cdiv(B, 2), 16))
    tb = _round_up(max(tile_b, 16), 16)
    g = pl.cdiv(B, tb)

    cost = pl.CostEstimate(
        flops=2 * g * tb * (D_IN * D_H1 + D_H1 * D_H2 + D_H2 * 1),
        transcendentals=g * tb,
        bytes_accessed=(B * D_IN * 4
                        + (w1.size + w2.size + w3.size) * 2
                        + (b1.size + b2.size + b3.size) * 4
                        + g * tb * 4),
    )

    out = pl.pallas_call(
        mlp_kernel,
        out_shape=jax.ShapeDtypeStruct((g, 1, tb), jnp.float32),
        grid=(g,),
        in_specs=[
            pl.BlockSpec((tb, D_IN), lambda i: (i, 0)),       # x tile (f32, double-buffered)
            pl.BlockSpec((D_IN, D_H1), lambda i: (0, 0)),     # W1 (VMEM-resident, no re-DMA)
            pl.BlockSpec((1, D_H1), lambda i: (0, 0)),        # b1
            pl.BlockSpec((D_H1, D_H2), lambda i: (0, 0)),     # W2
            pl.BlockSpec((1, D_H2), lambda i: (0, 0)),        # b2
            pl.BlockSpec((1, D_H2), lambda i: (0, 0)),        # W3 as a row vector
            pl.BlockSpec(memory_space=pltpu.MemorySpace.SMEM),  # b3 (1,1) scalar in SMEM
        ],
        out_specs=pl.BlockSpec((None, 1, tb), lambda i: (i, 0, 0)),
        compiler_params=pltpu.CompilerParams(
            dimension_semantics=("parallel",),
            vmem_limit_bytes=32 * 1024 * 1024,
        ),
        cost_estimate=cost,
    )(x, w1, b1, w2, b2, w3, b3)

    # (g, 1, tb) -> (g*tb, 1) in batch order; drop padded / garbage tail rows.
    return out.reshape(g * tb, 1)[:B]


def init_params(key):
    """PyTorch-style uniform(-1/sqrt(fan_in), 1/sqrt(fan_in)); weights stored [in, out] in bf16."""
    ks = jax.random.split(key, 6)

    def uni(k, shape, fan_in):
        bound = 1.0 / jnp.sqrt(fan_in)
        return jax.random.uniform(k, shape, jnp.float32, -bound, bound)

    w1 = uni(ks[0], (D_IN, D_H1), D_IN).astype(jnp.bfloat16)
    b1 = uni(ks[1], (1, D_H1), D_IN)
    w2 = uni(ks[2], (D_H1, D_H2), D_H1).astype(jnp.bfloat16)
    b2 = uni(ks[3], (1, D_H2), D_H1)
    w3 = uni(ks[4], (1, D_H2), D_H2).astype(jnp.bfloat16)   # fc3 weight kept as PyTorch's (1, 256) row
    b3 = uni(ks[5], (1, 1), D_H2)
    return w1, b1, w2, b2, w3, b3


def reference_forward(x, params):
    """f32 reference using the same bf16-stored weights (only in-kernel activation casts differ)."""
    w1, b1, w2, b2, w3, b3 = params
    xf = x.astype(jnp.bfloat16).astype(jnp.float32)
    h1 = jnp.maximum(xf @ w1.astype(jnp.float32) + b1, 0.0)
    h2 = jnp.maximum(h1 @ w2.astype(jnp.float32) + b2, 0.0)
    z3 = h2 @ w3.astype(jnp.float32).T + b3
    return jax.nn.sigmoid(z3)


if __name__ == "__main__":
    key = jax.random.PRNGKey(0)
    k_param, k_x = jax.random.split(key)

    params = init_params(k_param)
    B = 8
    x = jax.random.normal(k_x, (B, D_IN), jnp.float32)

    y = jax.block_until_ready(simple_nn_forward(x, params))
    y_ref = reference_forward(x, params)

    assert y.shape == (B, 1), y.shape
    assert jnp.allclose(y, y_ref, atol=2e-2, rtol=0.0), float(jnp.abs(y - y_ref).max())

    print("KERNEL_OK")
</pallas_src>

<mosaic_0001>
module attributes {stable_mosaic.version = 11 : i64} {
  func.func @mlp_kernel(%arg0: i32, %arg1: memref<16x512xf32, #tpu.memory_space<vmem>>, %arg2: memref<512x512xbf16, #tpu.memory_space<vmem>>, %arg3: memref<1x512xf32, #tpu.memory_space<vmem>>, %arg4: memref<512x256xbf16, #tpu.memory_space<vmem>>, %arg5: memref<1x256xf32, #tpu.memory_space<vmem>>, %arg6: memref<1x256xbf16, #tpu.memory_space<vmem>>, %arg7: memref<1x1xf32, #tpu.memory_space<smem>>, %arg8: memref<1x1x16xf32, #tpu.memory_space<vmem>>) attributes {dimension_semantics = [#tpu.dimension_semantics<parallel>], iteration_bounds = array<i64: 1>, scalar_prefetch = 0 : i64, scratch_operands = 0 : i64, tpu.core_type = #tpu.core_type<tc>, window_params = [{transform_indices = @transform_0, window_bounds = array<i64: 16, 512>}, {pipeline_mode = #tpu.pipeline_mode<synchronous>, transform_indices = @transform_1, window_bounds = array<i64: 512, 512>}, {pipeline_mode = #tpu.pipeline_mode<synchronous>, transform_indices = @transform_2, window_bounds = array<i64: 1, 512>}, {pipeline_mode = #tpu.pipeline_mode<synchronous>, transform_indices = @transform_3, window_bounds = array<i64: 512, 256>}, {pipeline_mode = #tpu.pipeline_mode<synchronous>, transform_indices = @transform_4, window_bounds = array<i64: 1, 256>}, {pipeline_mode = #tpu.pipeline_mode<synchronous>, transform_indices = @transform_5, window_bounds = array<i64: 1, 256>}, {transform_indices = @transform_6, window_bounds = array<i64: 1, 1>}, {transform_indices = @transform_7, window_bounds = array<i64: 1, 1, 16>}]} {
    %c0 = arith.constant 0 : index
    %c0_0 = arith.constant 0 : index
    %0 = vector.load %arg1[%c0, %c0_0] : memref<16x512xf32, #tpu.memory_space<vmem>>, vector<16x512xf32>
    %1 = arith.truncf %0 : vector<16x512xf32> to vector<16x512xbf16>
    %c0_1 = arith.constant 0 : index
    %c0_2 = arith.constant 0 : index
    %2 = vector.load %arg2[%c0_1, %c0_2] : memref<512x512xbf16, #tpu.memory_space<vmem>>, vector<512x512xbf16>
    %cst = arith.constant dense<0.000000e+00> : vector<16x512xf32>
    %3 = tpu.matmul %1, %2, %cst {dimension_numbers = #tpu.dot_dimension_numbers<[1], [0], [0], [1], [0, 0, 1, 1], [], []>} : vector<16x512xbf16>, vector<512x512xbf16>, vector<16x512xf32> -> vector<16x512xf32>
    %c0_3 = arith.constant 0 : index
    %c0_4 = arith.constant 0 : index
    %4 = vector.load %arg3[%c0_3, %c0_4] : memref<1x512xf32, #tpu.memory_space<vmem>>, vector<1x512xf32>
    %5 = vector.broadcast %4 : vector<1x512xf32> to vector<16x512xf32>
    %6 = arith.addf %3, %5 : vector<16x512xf32>
    %cst_5 = arith.constant 0.000000e+00 : f32
    %7 = vector.broadcast %cst_5 : f32 to vector<16x512xf32>
    %8 = arith.maximumf %6, %7 : vector<16x512xf32>
    %9 = arith.truncf %8 : vector<16x512xf32> to vector<16x512xbf16>
    %c0_6 = arith.constant 0 : index
    %c0_7 = arith.constant 0 : index
    %10 = vector.load %arg4[%c0_6, %c0_7] : memref<512x256xbf16, #tpu.memory_space<vmem>>, vector<512x256xbf16>
    %cst_8 = arith.constant dense<0.000000e+00> : vector<16x256xf32>
    %11 = tpu.matmul %9, %10, %cst_8 {dimension_numbers = #tpu.dot_dimension_numbers<[1], [0], [0], [1], [0, 0, 1, 1], [], []>} : vector<16x512xbf16>, vector<512x256xbf16>, vector<16x256xf32> -> vector<16x256xf32>
    %c0_9 = arith.constant 0 : index
    %c0_10 = arith.constant 0 : index
    %12 = vector.load %arg5[%c0_9, %c0_10] : memref<1x256xf32, #tpu.memory_space<vmem>>, vector<1x256xf32>
    %13 = vector.broadcast %12 : vector<1x256xf32> to vector<16x256xf32>
    %14 = arith.addf %11, %13 : vector<16x256xf32>
    %cst_11 = arith.constant 0.000000e+00 : f32
    %15 = vector.broadcast %cst_11 : f32 to vector<16x256xf32>
    %16 = arith.maximumf %14, %15 : vector<16x256xf32>
    %17 = arith.truncf %16 : vector<16x256xf32> to vector<16x256xbf16>
    %c0_12 = arith.constant 0 : index
    %c0_13 = arith.constant 0 : index
    %18 = vector.load %arg6[%c0_12, %c0_13] : memref<1x256xbf16, #tpu.memory_space<vmem>>, vector<1x256xbf16>
    %cst_14 = arith.constant dense<0.000000e+00> : vector<1x16xf32>
    %19 = tpu.matmul %18, %17, %cst_14 {dimension_numbers = #tpu.dot_dimension_numbers<[1], [1], [0], [0], [0, 0, 1, 0], [], []>} : vector<1x256xbf16>, vector<16x256xbf16>, vector<1x16xf32> -> vector<1x16xf32>
    %c0_15 = arith.constant 0 : index
    %c0_16 = arith.constant 0 : index
    %20 = memref.load %arg7[%c0_15, %c0_16] : memref<1x1xf32, #tpu.memory_space<smem>>
    %21 = vector.broadcast %20 : f32 to vector<1x16xf32>
    %22 = arith.addf %19, %21 : vector<1x16xf32>
    %23 = arith.negf %22 : vector<1x16xf32>
    %24 = math.exp %23 : vector<1x16xf32>
    %cst_17 = arith.constant 1.000000e+00 : f32
    %25 = vector.broadcast %cst_17 : f32 to vector<1x16xf32>
    %26 = arith.addf %25, %24 : vector<1x16xf32>
    %27 = arith.divf %25, %26 : vector<1x16xf32>
    %c0_18 = arith.constant 0 : index
    %c0_19 = arith.constant 0 : index
    %c0_20 = arith.constant 0 : index
    %28 = vector.load %arg8[%c0_18, %c0_19, %c0_20] : memref<1x1x16xf32, #tpu.memory_space<vmem>>, vector<1x1x16xf32>
    %29 = vector.shape_cast %28 : vector<1x1x16xf32> to vector<1x16xf32>
    %30 = vector.shape_cast %27 : vector<1x16xf32> to vector<1x1x16xf32>
    tpu.vector_store %arg8[%c0_18, %c0_19, %c0_20], %30 {strides = array<i32>} : memref<1x1x16xf32, #tpu.memory_space<vmem>>, vector<1x1x16xf32>,
    return
  }
  func.func @transform_0(%arg0: i32) -> (i32, i32) {
    %c0_i32 = arith.constant 0 : i32
    %c0_i32_0 = arith.constant 0 : i32
    return %arg0, %c0_i32 : i32, i32
  }
  func.func @transform_1(%arg0: i32) -> (i32, i32) {
    %c0_i32 = arith.constant 0 : i32
    %c0_i32_0 = arith.constant 0 : i32
    %c0_i32_1 = arith.constant 0 : i32
    return %c0_i32, %c0_i32_0 : i32, i32
  }
  func.func @transform_2(%arg0: i32) -> (i32, i32) {
    %c0_i32 = arith.constant 0 : i32
    %c0_i32_0 = arith.constant 0 : i32
    %c0_i32_1 = arith.constant 0 : i32
    return %c0_i32, %c0_i32_0 : i32, i32
  }
  func.func @transform_3(%arg0: i32) -> (i32, i32) {
    %c0_i32 = arith.constant 0 : i32
    %c0_i32_0 = arith.constant 0 : i32
    %c0_i32_1 = arith.constant 0 : i32
    return %c0_i32, %c0_i32_0 : i32, i32
  }
  func.func @transform_4(%arg0: i32) -> (i32, i32) {
    %c0_i32 = arith.constant 0 : i32
    %c0_i32_0 = arith.constant 0 : i32
    %c0_i32_1 = arith.constant 0 : i32
    return %c0_i32, %c0_i32_0 : i32, i32
  }
  func.func @transform_5(%arg0: i32) -> (i32, i32) {
    %c0_i32 = arith.constant 0 : i32
    %c0_i32_0 = arith.constant 0 : i32
    %c0_i32_1 = arith.constant 0 : i32
    return %c0_i32, %c0_i32_0 : i32, i32
  }
  func.func @transform_6(%arg0: i32) -> (i32, i32) {
    %c0_i32 = arith.constant 0 : i32
    %c0_i32_0 = arith.constant 0 : i32
    %c0_i32_1 = arith.constant 0 : i32
    return %c0_i32, %c0_i32_0 : i32, i32
  }
  func.func @transform_7(%arg0: i32) -> (i32, i32, i32) {
    %c0_i32 = arith.constant 0 : i32
    %c0_i32_0 = arith.constant 0 : i32
    %c0_i32_1 = arith.constant 0 : i32
    return %arg0, %c0_i32, %c0_i32_0 : i32, i32, i32
  }
}

</mosaic_0001>

<bundles_post_ra>
// kernel: tpu_custom_call.1
= control target key start
LH: loop header
LB: loop body
LE: loop exit
PB: predicated region body
PF: predicated region fallthrough
CT: control target
= control target key end

     0   :  { %13 = vsyncpa [#allocation4], 0  ;;  %s2317_s0 = inlined_call_operand.hbm [shape: f32[8,512], index: 0, kind: input, shape index: {}]   ;;  %s2318_s1 = inlined_call_operand.hbm [shape: bf16[512,512], index: 1, kind: input, shape index: {}]   ;;  %s2319_s2 = inlined_call_operand.vmem [shape: f32[1,512], index: 2, kind: input, shape index: {}]   ;;  %s2320_s3 = inlined_call_operand.hbm [shape: bf16[512,256], index: 3, kind: input, shape index: {}]   ;;  %s2321_s4 = inlined_call_operand.vmem [shape: f32[1,256], index: 4, kind: input, shape index: {}]   ;;  %s2322_s5 = inlined_call_operand.vmem [shape: bf16[1,256], index: 5, kind: input, shape index: {}]   ;;  %s2323_s6 = inlined_call_operand.<no memory space> [shape: f32[1,1], index: 6, kind: input, shape index: {}]   ;;  %s2324_s7 = inlined_call_operand.hbm [shape: f32[1,1,16], index: 7, kind: output, shape index: {}]  }
   0x1   :  { %14 = vsyncpa [#allocation7], 0 }
   0x2   :  { %15 = vsyncpa [#allocation5], 0 }
   0x3   :  { %20 = vsyncadd [#allocation4], 512  ;;  %s2219_s24 = smov [#allocation6]  }
   0x4   :  { %s33_s25 = sshll.u32 %s2219_s24, 4  ;;  %s34_s25 = int_to_ptr.vmem [resolvable:$true] %s33_s25 }
   0x5   :  { %s2141_s26 = scalar_lea.vmem %s34_s25, 16384  ;;  %p2146_p1 = scmp.lt.s32.totalorder %s34_s25, %s34_s25 }
   0x6   :  { %p2142_p0 = scmp.ne.s32.totalorder %s34_s25, %s2141_s26  ;;  %p2147_p2 = scmp.lt.s32.totalorder %s2141_s26, %s2141_s26 }
   0x8   :  { %p2148_p3 = por %p2147_p2, %p2146_p1 }
   0xa   :  { %p2149_p4 = pnand %p2148_p3, %p2142_p0 }
   0xc   :  { %2152 = shalt.err (!%p2149_p4)
}
   0xd   :  { %s2220_s27 = smov 256   ;;  %s2221_s28 = smov 16  }
   0xe   :  { %39 = dma.hbm_to_vmem [thread:$0]  %s2318_s1, 16384, %s34_s25, [#allocation7], %s2220_s27, %s2220_s27, %s2221_s28  }
   0xf   :  { %s2222_s8 = smov [#allocation3]  }
  0x10   :  { %s21_s9 = sshll.u32 %s2222_s8, 4  ;;  %s22_s9 = int_to_ptr.vmem [resolvable:$true] %s21_s9 }
  0x11   :  { %s2161_s10 = scalar_lea.vmem %s22_s9, 512  ;;  %s2165_s11 = scalar_lea.vmem %s22_s9, 1024 }
  0x12   :  { %p2162_p5 = scmp.ne.s32.totalorder %s22_s9, %s2161_s10  ;;  %p2166_p6 = scmp.lt.s32.totalorder %s22_s9, %s22_s9 }
  0x13   :  { %p2167_p7 = scmp.lt.s32.totalorder %s2165_s11, %s2161_s10 }
  0x15   :  { %p2168_p8 = por %p2167_p7, %p2166_p6 }
  0x17   :  { %p2169_p9 = pnand %p2168_p8, %p2162_p5 }
  0x19   :  { %2172 = shalt.err (!%p2169_p9)
}
  0x1a   :  { %s2223_s12 = smov 512   ;;  %s2224_s13 = smov 32  }
  0x1b   :  { %27 = dma.hbm_to_vmem [thread:$0]  %s2317_s0, 512, %s22_s9, [#allocation4], %s2223_s12, %s2223_s12, %s2224_s13  }
  0x1c   :  { %s2225_s16 = smov [#allocation8]  }
  0x1d   :  { %s47_s17 = sshll.u32 %s2225_s16, 4  ;;  %s48_s17 = int_to_ptr.vmem [resolvable:$true] %s47_s17 }
  0x1e   :  { %s2181_s1 = scalar_lea.vmem %s48_s17, 8192  ;;  %p2186_p11 = scmp.lt.s32.totalorder %s48_s17, %s48_s17 }
  0x1f   :  { %p2182_p10 = scmp.ne.s32.totalorder %s48_s17, %s2181_s1  ;;  %p2187_p12 = scmp.lt.s32.totalorder %s2181_s1, %s2181_s1 }
  0x21   :  { %p2188_p13 = por %p2187_p12, %p2186_p11 }
  0x23   :  { %p2189_p0 = pnand %p2188_p13, %p2182_p10 }
  0x25   :  { %2192 = shalt.err (!%p2189_p0)
}
  0x26   :  { %s2226_s18 = smov 128   ;;  %s2227_s19 = smov 8  }
  0x27   :  { %53 = dma.hbm_to_vmem [thread:$0]  %s2320_s3, 8192, %s48_s17, [#allocation7], %s2226_s18, %s2226_s18, %s2227_s19  }
  0x28   :  { %2213 = dma.done.wait [#allocation4], 1024  }
  0x29   :  { %2214 = vsyncadd [#allocation4], 4294966272 }
  0x2a   :  { %2215 = dma.done.wait [#allocation7], 24576  }
  0x2b   :  { %2216 = vsyncadd [#allocation7], 4294942720  ;;  %v1841_v0 = vld [vmem:[#allocation6 + $0xe4] ss:$16 sps:$4 sm:$0xff]   ;;  %v1845_v2 = vld [vmem:[#allocation6 + $0xe0] ss:$16 sps:$4 sm:$0xff]  }
  0x2c   :  { %v1843_v1 = vld [vmem:[#allocation6 + $0x2e4] ss:$16 sps:$4 sm:$0xff]   ;;  %872 = vmatprep.subr.bf16.mxu0 %v1841_v0  ;;  %v1846_v3 = vld [vmem:[#allocation6 + $0x2e0] ss:$16 sps:$4 sm:$0xff]   ;;  %v71_v46 = vld [vmem:[#allocation3 + $0x8] sm:$0xff]  ;;  %s2229_s25 = smov [#allocation9]  }
  0x2d   :  { %915 = vmatprep.subr.bf16.mxu1 %v1843_v1  ;;  %v1847_v4 = vld [vmem:[#allocation6 + $0xc4] ss:$16 sps:$4 sm:$0xff]   ;;  %873 = vmatpush1.bf16.msra.mxu0 %v1845_v2  ;;  %v1851_v6 = vld [vmem:[#allocation6 + $0xc0] ss:$16 sps:$4 sm:$0xff]   ;;  %v75_v47 = vld [vmem:[#allocation3 + $0x28] sm:$0xff]  ;;  %s1626_s26 = sshll.u32 %s2229_s25, 4  ;;  %s1627_s26 = int_to_ptr.vmem [resolvable:$true] %s1626_s26 }
  0x2e   :  { %916 = vmatpush1.bf16.msra.mxu1 %v1846_v3  ;;  %v1849_v5 = vld [vmem:[#allocation6 + $0x2c4] ss:$16 sps:$4 sm:$0xff]   ;;  %874 = vmatprep.subr.bf16.mxu0 %v1847_v4  ;;  %v1852_v7 = vld [vmem:[#allocation6 + $0x2c0] ss:$16 sps:$4 sm:$0xff]   ;;  %v73_v48 = vld [vmem:[#allocation3 + $0x18] sm:$0xff]  ;;  %v79_v53 = vpack.c.bf16 %v75_v47, %v71_v46  ;;  %vm1618_vm0 = vcmask 122880   ;;  %p2198_p2 = scmp.lt.s32.totalorder %s1627_s26, %s1627_s26 }
  0x2f   :  { %917 = vmatprep.subr.bf16.mxu1 %v1849_v5  ;;  %v1853_v8 = vld [vmem:[#allocation6 + $0xa4] ss:$16 sps:$4 sm:$0xff]   ;;  %v1857_v10 = vld [vmem:[#allocation6 + $0xa0] ss:$16 sps:$4 sm:$0xff]   ;;  %v77_v49 = vld [vmem:[#allocation3 + $0x38] sm:$0xff]  ;;  %s2193_s27 = scalar_lea.vmem %s1627_s26, 16 }
  0x30   :  { %v1855_v9 = vld [vmem:[#allocation6 + $0x2a4] ss:$16 sps:$4 sm:$0xff]   ;;  %v1858_v11 = vld [vmem:[#allocation6 + $0x2a0] ss:$16 sps:$4 sm:$0xff]   ;;  %v81_v54 = vpack.c.bf16 %v77_v49, %v73_v48  ;;  %904 = vmatprep.mubr.bf16.mxu0 %v79_v53  ;;  %v1985_v46 = vld [vmem:[#allocation6 + $0x1e8] ss:$16 sps:$4 sm:$0xff]   ;;  %p2194_p1 = scmp.ne.s32.totalorder %s1627_s26, %s2193_s27 }
  0x31   :  { %875 = vmatpush1.bf16.msra.mxu0 %v1851_v6  ;;  %v1859_v12 = vld [vmem:[#allocation6 + $0x84] ss:$16 sps:$4 sm:$0xff]   ;;  %v1863_v14 = vld [vmem:[#allocation6 + $0x80] ss:$16 sps:$4 sm:$0xff]   ;;  %v1988_v47 = vld [vmem:[#allocation6 + $0x3e8] ss:$16 sps:$4 sm:$0xff]  }
  0x32   :  { %918 = vmatpush1.bf16.msra.mxu1 %v1852_v7  ;;  %876 = vmatprep.subr.bf16.mxu0 %v1853_v8  ;;  %v1861_v13 = vld [vmem:[#allocation6 + $0x284] ss:$16 sps:$4 sm:$0xff]   ;;  %v1864_v15 = vld [vmem:[#allocation6 + $0x280] ss:$16 sps:$4 sm:$0xff]   ;;  %v1993_v48 = vld [vmem:[#allocation6 + $0x1cc] ss:$16 sps:$4 sm:$0xff]  }
  0x33   :  { %919 = vmatprep.subr.bf16.mxu1 %v1855_v9  ;;  %v1865_v16 = vld [vmem:[#allocation6 + $0x64] ss:$16 sps:$4 sm:$0xff]   ;;  %v1869_v18 = vld [vmem:[#allocation6 + $0x60] ss:$16 sps:$4 sm:$0xff]   ;;  %947 = vmatprep.mubr.bf16.mxu1 %v81_v54  ;;  %v1996_v49 = vld [vmem:[#allocation6 + $0x3cc] ss:$16 sps:$4 sm:$0xff]  }
  0x34   :  { %v1867_v17 = vld [vmem:[#allocation6 + $0x264] ss:$16 sps:$4 sm:$0xff]   ;;  %v1870_v19 = vld [vmem:[#allocation6 + $0x260] ss:$16 sps:$4 sm:$0xff]   ;;  %s2197_s28 = scalar_lea.vmem %s1627_s26, 32 }
  0x35   :  { %877 = vmatpush1.bf16.msra.mxu0 %v1857_v10  ;;  %v1871_v20 = vld [vmem:[#allocation6 + $0x44] ss:$16 sps:$4 sm:$0xff]   ;;  %v1875_v22 = vld [vmem:[#allocation6 + $0x40] ss:$16 sps:$4 sm:$0xff]   ;;  %v1939_v10 = vld [vmem:[#allocation6 + $0xec] ss:$16 sps:$4 sm:$0xff]   ;;  %p2199_p3 = scmp.lt.s32.totalorder %s2197_s28, %s2193_s27 }
  0x36   :  { %920 = vmatpush1.bf16.msra.mxu1 %v1858_v11  ;;  %878 = vmatprep.subr.bf16.mxu0 %v1859_v12  ;;  %v1873_v21 = vld [vmem:[#allocation6 + $0x244] ss:$16 sps:$4 sm:$0xff]   ;;  %v1876_v23 = vld [vmem:[#allocation6 + $0x240] ss:$16 sps:$4 sm:$0xff]   ;;  %v1942_v11 = vld [vmem:[#allocation6 + $0x2ec] ss:$16 sps:$4 sm:$0xff]  }
  0x37   :  { %921 = vmatprep.subr.bf16.mxu1 %v1861_v13  ;;  %v1877_v24 = vld [vmem:[#allocation6 + $0x24] ss:$16 sps:$4 sm:$0xff]   ;;  %v1881_v26 = vld [vmem:[#allocation6 + $0x20] ss:$16 sps:$4 sm:$0xff]   ;;  %p2200_p4 = por %p2199_p3, %p2198_p2 }
  0x38   :  { %v1879_v25 = vld [vmem:[#allocation6 + $0x224] ss:$16 sps:$4 sm:$0xff]   ;;  %v1882_v27 = vld [vmem:[#allocation6 + $0x220] ss:$16 sps:$4 sm:$0xff]  }
  0x39   :  { %879 = vmatpush1.bf16.msra.mxu0 %v1863_v14  ;;  %v1883_v28 = vld [vmem:[#allocation6 + $0x4] ss:$16 sps:$4 sm:$0xff]   ;;  %v1887_v30 = vld [vmem:[#allocation6] ss:$16 sps:$4 sm:$0xff]   ;;  %v1937_v14 = vld [vmem:[#allocation6 + $0xe8] ss:$16 sps:$4 sm:$0xff]   ;;  %p2201_p5 = pnand %p2200_p4, %p2194_p1 }
  0x3a   :  { %922 = vmatpush1.bf16.msra.mxu1 %v1864_v15  ;;  %880 = vmatprep.subr.bf16.mxu0 %v1865_v16  ;;  %v1885_v29 = vld [vmem:[#allocation6 + $0x204] ss:$16 sps:$4 sm:$0xff]   ;;  %v1888_v31 = vld [vmem:[#allocation6 + $0x200] ss:$16 sps:$4 sm:$0xff]   ;;  %v1940_v15 = vld [vmem:[#allocation6 + $0x2e8] ss:$16 sps:$4 sm:$0xff]  }
  0x3b   :  { %923 = vmatprep.subr.bf16.mxu1 %v1867_v17  ;;  %v1889_v32 = vld [vmem:[#allocation6 + $0x1e4] ss:$16 sps:$4 sm:$0xff]   ;;  %v1893_v34 = vld [vmem:[#allocation6 + $0x1e0] ss:$16 sps:$4 sm:$0xff]   ;;  %v1945_v16 = vld [vmem:[#allocation6 + $0xcc] ss:$16 sps:$4 sm:$0xff]  }
  0x3c   :  { %v1891_v33 = vld [vmem:[#allocation6 + $0x3e4] ss:$16 sps:$4 sm:$0xff]   ;;  %v1894_v35 = vld [vmem:[#allocation6 + $0x3e0] ss:$16 sps:$4 sm:$0xff]   ;;  %v1948_v17 = vld [vmem:[#allocation6 + $0x2cc] ss:$16 sps:$4 sm:$0xff]  }
  0x3d   :  { %881 = vmatpush1.bf16.msra.mxu0 %v1869_v18  ;;  %v1895_v36 = vld [vmem:[#allocation6 + $0x1c4] ss:$16 sps:$4 sm:$0xff]   ;;  %v1899_v38 = vld [vmem:[#allocation6 + $0x1c0] ss:$16 sps:$4 sm:$0xff]   ;;  %v1943_v18 = vld [vmem:[#allocation6 + $0xc8] ss:$16 sps:$4 sm:$0xff]  }
  0x3e   :  { %924 = vmatpush1.bf16.msra.mxu1 %v1870_v19  ;;  %882 = vmatprep.subr.bf16.mxu0 %v1871_v20  ;;  %v1897_v37 = vld [vmem:[#allocation6 + $0x3c4] ss:$16 sps:$4 sm:$0xff]   ;;  %v1900_v39 = vld [vmem:[#allocation6 + $0x3c0] ss:$16 sps:$4 sm:$0xff]   ;;  %v1946_v19 = vld [vmem:[#allocation6 + $0x2c8] ss:$16 sps:$4 sm:$0xff]  }
  0x3f   :  { %925 = vmatprep.subr.bf16.mxu1 %v1873_v21  ;;  %v1901_v40 = vld [vmem:[#allocation6 + $0x1a4] ss:$16 sps:$4 sm:$0xff]   ;;  %v1905_v42 = vld [vmem:[#allocation6 + $0x1a0] ss:$16 sps:$4 sm:$0xff]   ;;  %v1951_v20 = vld [vmem:[#allocation6 + $0xac] ss:$16 sps:$4 sm:$0xff]  }
  0x40   :  { %v1903_v41 = vld [vmem:[#allocation6 + $0x3a4] ss:$16 sps:$4 sm:$0xff]   ;;  %v1906_v43 = vld [vmem:[#allocation6 + $0x3a0] ss:$16 sps:$4 sm:$0xff]   ;;  %v1954_v21 = vld [vmem:[#allocation6 + $0x2ac] ss:$16 sps:$4 sm:$0xff]  }
  0x41   :  { %883 = vmatpush1.bf16.msra.mxu0 %v1875_v22  ;;  %v1907_v44 = vld [vmem:[#allocation6 + $0x184] ss:$16 sps:$4 sm:$0xff]   ;;  %v1911_v50 = vld [vmem:[#allocation6 + $0x180] ss:$16 sps:$4 sm:$0xff]   ;;  %v1949_v22 = vld [vmem:[#allocation6 + $0xa8] ss:$16 sps:$4 sm:$0xff]  }
  0x42   :  { %926 = vmatpush1.bf16.msra.mxu1 %v1876_v23  ;;  %884 = vmatprep.subr.bf16.mxu0 %v1877_v24  ;;  %v1909_v45 = vld [vmem:[#allocation6 + $0x384] ss:$16 sps:$4 sm:$0xff]   ;;  %v1912_v51 = vld [vmem:[#allocation6 + $0x380] ss:$16 sps:$4 sm:$0xff]   ;;  %v1952_v23 = vld [vmem:[#allocation6 + $0x2a8] ss:$16 sps:$4 sm:$0xff]  }
  0x43   :  { %927 = vmatprep.subr.bf16.mxu1 %v1879_v25  ;;  %v1913_v52 = vld [vmem:[#allocation6 + $0x164] ss:$16 sps:$4 sm:$0xff]   ;;  %v1917_v56 = vld [vmem:[#allocation6 + $0x160] ss:$16 sps:$4 sm:$0xff]   ;;  %v1957_v24 = vld [vmem:[#allocation6 + $0x8c] ss:$16 sps:$4 sm:$0xff]  }
  0x44   :  { %v1915_v55 = vld [vmem:[#allocation6 + $0x364] ss:$16 sps:$4 sm:$0xff]   ;;  %v1918_v57 = vld [vmem:[#allocation6 + $0x360] ss:$16 sps:$4 sm:$0xff]   ;;  %v1960_v25 = vld [vmem:[#allocation6 + $0x28c] ss:$16 sps:$4 sm:$0xff]  }
  0x45   :  { %885 = vmatpush1.bf16.msra.mxu0 %v1881_v26  ;;  %v1919_v58 = vld [vmem:[#allocation6 + $0x144] ss:$16 sps:$4 sm:$0xff]   ;;  %v1923_v60 = vld [vmem:[#allocation6 + $0x140] ss:$16 sps:$4 sm:$0xff]   ;;  %v1955_v26 = vld [vmem:[#allocation6 + $0x88] ss:$16 sps:$4 sm:$0xff]  }
  0x46   :  { %928 = vmatpush1.bf16.msra.mxu1 %v1882_v27  ;;  %886 = vmatprep.subr.bf16.mxu0 %v1883_v28  ;;  %v1921_v59 = vld [vmem:[#allocation6 + $0x344] ss:$16 sps:$4 sm:$0xff]   ;;  %v1924_v61 = vld [vmem:[#allocation6 + $0x340] ss:$16 sps:$4 sm:$0xff]   ;;  %v1958_v27 = vld [vmem:[#allocation6 + $0x288] ss:$16 sps:$4 sm:$0xff]  }
  0x47   :  { %929 = vmatprep.subr.bf16.mxu1 %v1885_v29  ;;  %v1925_v62 = vld [vmem:[#allocation6 + $0x124] ss:$16 sps:$4 sm:$0xff]   ;;  %v1929_v0 = vld [vmem:[#allocation6 + $0x120] ss:$16 sps:$4 sm:$0xff]   ;;  %v1963_v28 = vld [vmem:[#allocation6 + $0x6c] ss:$16 sps:$4 sm:$0xff]  }
  0x48   :  { %v1927_v63 = vld [vmem:[#allocation6 + $0x324] ss:$16 sps:$4 sm:$0xff]   ;;  %v1930_v1 = vld [vmem:[#allocation6 + $0x320] ss:$16 sps:$4 sm:$0xff]   ;;  %v1966_v29 = vld [vmem:[#allocation6 + $0x26c] ss:$16 sps:$4 sm:$0xff]  }
  0x49   :  { %887 = vmatpush1.bf16.msra.mxu0 %v1887_v30  ;;  %v1931_v2 = vld [vmem:[#allocation6 + $0x104] ss:$16 sps:$4 sm:$0xff]   ;;  %v1935_v4 = vld [vmem:[#allocation6 + $0x100] ss:$16 sps:$4 sm:$0xff]   ;;  %v1961_v30 = vld [vmem:[#allocation6 + $0x68] ss:$16 sps:$4 sm:$0xff]  }
  0x4a   :  { %930 = vmatpush1.bf16.msra.mxu1 %v1888_v31  ;;  %888 = vmatprep.subr.bf16.mxu0 %v1889_v32  ;;  %v1933_v3 = vld [vmem:[#allocation6 + $0x304] ss:$16 sps:$4 sm:$0xff]   ;;  %v1936_v5 = vld [vmem:[#allocation6 + $0x300] ss:$16 sps:$4 sm:$0xff]   ;;  %v1964_v31 = vld [vmem:[#allocation6 + $0x268] ss:$16 sps:$4 sm:$0xff]  }
  0x4b   :  { %931 = vmatprep.subr.bf16.mxu1 %v1891_v33  ;;  %v70_v6 = vld [vmem:[#allocation3] sm:$0xff]  ;;  %v72_v8 = vld [vmem:[#allocation3 + $0x10] sm:$0xff]  ;;  %v1969_v32 = vld [vmem:[#allocation6 + $0x4c] ss:$16 sps:$4 sm:$0xff]  }
  0x4c   :  { %v74_v7 = vld [vmem:[#allocation3 + $0x20] sm:$0xff]  ;;  %v76_v9 = vld [vmem:[#allocation3 + $0x30] sm:$0xff]  ;;  %v1972_v33 = vld [vmem:[#allocation6 + $0x24c] ss:$16 sps:$4 sm:$0xff]  }
  0x4d   :  { %889 = vmatpush2.bf16.msra.mxu0 %v1893_v34  ;;  %v2279_v12 = vpack.c.bf16 %v74_v7, %v70_v6  ;;  %v2281_v13 = vpack.c.bf16 %v76_v9, %v72_v8  ;;  %v1967_v34 = vld [vmem:[#allocation6 + $0x48] ss:$16 sps:$4 sm:$0xff]   ;;  %v2029_v8 = vld [vmem:[#allocation6 + $0x10c] ss:$16 sps:$4 sm:$0xff]  }
  0x4e   :  { %932 = vmatpush2.bf16.msra.mxu1 %v1894_v35  ;;  %890 = vmatprep.subr.bf16.mxu0 %v1895_v36  ;;  %v1970_v35 = vld [vmem:[#allocation6 + $0x248] ss:$16 sps:$4 sm:$0xff]   ;;  %v1975_v36 = vld [vmem:[#allocation6 + $0x2c] ss:$16 sps:$4 sm:$0xff]  }
  0x4f   :  { %933 = vmatprep.subr.bf16.mxu1 %v1897_v37  ;;  %v1978_v37 = vld [vmem:[#allocation6 + $0x22c] ss:$16 sps:$4 sm:$0xff]   ;;  %v2021_v6 = vld [vmem:[#allocation6 + $0x128] ss:$16 sps:$4 sm:$0xff]  }
  0x50   :  { %v2024_v7 = vld [vmem:[#allocation6 + $0x328] ss:$16 sps:$4 sm:$0xff]   ;;  %v2032_v9 = vld [vmem:[#allocation6 + $0x30c] ss:$16 sps:$4 sm:$0xff]  }
  0x51   :  { %891 = vmatpush2.bf16.msra.mxu0 %v1899_v38  ;;  %v1973_v38 = vld [vmem:[#allocation6 + $0x28] ss:$16 sps:$4 sm:$0xff]  }
  0x52   :  { %934 = vmatpush2.bf16.msra.mxu1 %v1900_v39  ;;  %892 = vmatprep.subr.bf16.mxu0 %v1901_v40  ;;  %v1976_v39 = vld [vmem:[#allocation6 + $0x228] ss:$16 sps:$4 sm:$0xff]   ;;  %v1981_v40 = vld [vmem:[#allocation6 + $0xc] ss:$16 sps:$4 sm:$0xff]  }
  0x53   :  { %935 = vmatprep.subr.bf16.mxu1 %v1903_v41  ;;  %v1984_v41 = vld [vmem:[#allocation6 + $0x20c] ss:$16 sps:$4 sm:$0xff]  }
  0x55   :  { %893 = vmatpush2.bf16.msra.mxu0 %v1905_v42  ;;  %v1979_v42 = vld [vmem:[#allocation6 + $0x8] ss:$16 sps:$4 sm:$0xff]  }
  0x56   :  { %936 = vmatpush2.bf16.msra.mxu1 %v1906_v43  ;;  %894 = vmatprep.subr.bf16.mxu0 %v1907_v44  ;;  %v1982_v43 = vld [vmem:[#allocation6 + $0x208] ss:$16 sps:$4 sm:$0xff]   ;;  %v1987_v44 = vld [vmem:[#allocation6 + $0x1ec] ss:$16 sps:$4 sm:$0xff]  }
  0x57   :  { %937 = vmatprep.subr.bf16.mxu1 %v1909_v45  ;;  %v1990_v45 = vld [vmem:[#allocation6 + $0x3ec] ss:$16 sps:$4 sm:$0xff]  }
  0x59   :  { %895 = vmatpush2.bf16.msra.mxu0 %v1911_v50  ;;  %v1991_v50 = vld [vmem:[#allocation6 + $0x1c8] ss:$16 sps:$4 sm:$0xff]  }
  0x5a   :  { %938 = vmatpush2.bf16.msra.mxu1 %v1912_v51  ;;  %896 = vmatprep.subr.bf16.mxu0 %v1913_v52  ;;  %v1994_v51 = vld [vmem:[#allocation6 + $0x3c8] ss:$16 sps:$4 sm:$0xff]   ;;  %v1999_v52 = vld [vmem:[#allocation6 + $0x1ac] ss:$16 sps:$4 sm:$0xff]  }
  0x5b   :  { %939 = vmatprep.subr.bf16.mxu1 %v1915_v55  ;;  %v2000_v55 = vld [vmem:[#allocation6 + $0x3a8] ss:$16 sps:$4 sm:$0xff]  }
  0x5d   :  { %897 = vmatpush2.bf16.msra.mxu0 %v1917_v56  ;;  %v2005_v56 = vld [vmem:[#allocation6 + $0x18c] ss:$16 sps:$4 sm:$0xff]  }
  0x5e   :  { %940 = vmatpush2.bf16.msra.mxu1 %v1918_v57  ;;  %898 = vmatprep.subr.bf16.mxu0 %v1919_v58  ;;  %v2008_v57 = vld [vmem:[#allocation6 + $0x38c] ss:$16 sps:$4 sm:$0xff]   ;;  %v2003_v58 = vld [vmem:[#allocation6 + $0x188] ss:$16 sps:$4 sm:$0xff]  }
  0x5f   :  { %941 = vmatprep.subr.bf16.mxu1 %v1921_v59  ;;  %v2006_v59 = vld [vmem:[#allocation6 + $0x388] ss:$16 sps:$4 sm:$0xff]  }
  0x61   :  { %899 = vmatpush2.bf16.msra.mxu0 %v1923_v60  ;;  %v2011_v60 = vld [vmem:[#allocation6 + $0x16c] ss:$16 sps:$4 sm:$0xff]  }
  0x62   :  { %942 = vmatpush2.bf16.msra.mxu1 %v1924_v61  ;;  %900 = vmatprep.subr.bf16.mxu0 %v1925_v62  ;;  %v2014_v61 = vld [vmem:[#allocation6 + $0x36c] ss:$16 sps:$4 sm:$0xff]   ;;  %v2009_v62 = vld [vmem:[#allocation6 + $0x168] ss:$16 sps:$4 sm:$0xff]  }
  0x63   :  { %943 = vmatprep.subr.bf16.mxu1 %v1927_v63  ;;  %v2012_v63 = vld [vmem:[#allocation6 + $0x368] ss:$16 sps:$4 sm:$0xff]  }
  0x65   :  { %901 = vmatpush2.bf16.msra.mxu0 %v1929_v0  ;;  %v2017_v0 = vld [vmem:[#allocation6 + $0x14c] ss:$16 sps:$4 sm:$0xff]  }
  0x66   :  { %944 = vmatpush2.bf16.msra.mxu1 %v1930_v1  ;;  %902 = vmatprep.subr.bf16.mxu0 %v1931_v2  ;;  %v2020_v1 = vld [vmem:[#allocation6 + $0x34c] ss:$16 sps:$4 sm:$0xff]   ;;  %v2015_v2 = vld [vmem:[#allocation6 + $0x148] ss:$16 sps:$4 sm:$0xff]  }
  0x67   :  { %945 = vmatprep.subr.bf16.mxu1 %v1933_v3  ;;  %v2018_v3 = vld [vmem:[#allocation6 + $0x348] ss:$16 sps:$4 sm:$0xff]  }
  0x69   :  { %903 = vmatpush2.bf16.msra.mxu0 %v1935_v4  ;;  %v2023_v4 = vld [vmem:[#allocation6 + $0x12c] ss:$16 sps:$4 sm:$0xff]  }
  0x6a   :  { %946 = vmatpush2.bf16.msra.mxu1 %v1936_v5  ;;  %958 = vmatprep.subr.bf16.mxu0 %v1939_v10  ;;  %v2026_v5 = vld [vmem:[#allocation6 + $0x32c] ss:$16 sps:$4 sm:$0xff]   ;;  %v2027_v10 = vld [vmem:[#allocation6 + $0x108] ss:$16 sps:$4 sm:$0xff]  }
  0x6b   :  { %1001 = vmatprep.subr.bf16.mxu1 %v1942_v11  ;;  %v2030_v11 = vld [vmem:[#allocation6 + $0x308] ss:$16 sps:$4 sm:$0xff]  }
  0x6c   :  { %905 = vmatmul.mubr.bf16.vlgmr.msra.gmra.mxu0 %v2279_v12 }
  0x6d   :  { %948 = vmatmul.mubr.bf16.vlgmr.msra.gmra.mxu1 %v2281_v13  ;;  %959 = vmatpush1.bf16.msra.mxu0 %v1937_v14  ;;  %v2035_v14 = vld [vmem:[#allocation8 + $0x74] ss:$8 sps:$4 sm:$0xff]  }
  0x6e   :  { %1002 = vmatpush1.bf16.msra.mxu1 %v1940_v15  ;;  %960 = vmatprep.subr.bf16.mxu0 %v1945_v16  ;;  %v2033_v15 = vld [vmem:[#allocation8 + $0x70] ss:$8 sps:$4 sm:$0xff]   ;;  %v2038_v16 = vld [vmem:[#allocation8 + $0x64] ss:$8 sps:$4 sm:$0xff]  }
  0x6f   :  { %1003 = vmatprep.subr.bf16.mxu1 %v1948_v17  ;;  %990 = vmatprep.mubr.bf16.mxu0 %v79_v53  ;;  %v2002_v53 = vld [vmem:[#allocation6 + $0x3ac] ss:$16 sps:$4 sm:$0xff]   ;;  %v2036_v17 = vld [vmem:[#allocation8 + $0x60] ss:$8 sps:$4 sm:$0xff]  }
  0x70   :  { %1033 = vmatprep.mubr.bf16.mxu1 %v81_v54  ;;  %v1997_v54 = vld [vmem:[#allocation6 + $0x1a8] ss:$16 sps:$4 sm:$0xff]  }
  0x71   :  { %961 = vmatpush1.bf16.msra.mxu0 %v1943_v18  ;;  %v2041_v18 = vld [vmem:[#allocation8 + $0x54] ss:$8 sps:$4 sm:$0xff]  }
  0x72   :  { %1004 = vmatpush1.bf16.msra.mxu1 %v1946_v19  ;;  %962 = vmatprep.subr.bf16.mxu0 %v1951_v20  ;;  %v2039_v19 = vld [vmem:[#allocation8 + $0x50] ss:$8 sps:$4 sm:$0xff]   ;;  %v2044_v20 = vld [vmem:[#allocation8 + $0x44] ss:$8 sps:$4 sm:$0xff]  }
  0x73   :  { %1005 = vmatprep.subr.bf16.mxu1 %v1954_v21  ;;  %v2042_v21 = vld [vmem:[#allocation8 + $0x40] ss:$8 sps:$4 sm:$0xff]  }
  0x75   :  { %963 = vmatpush1.bf16.msra.mxu0 %v1949_v22  ;;  %v2047_v22 = vld [vmem:[#allocation8 + $0x34] ss:$8 sps:$4 sm:$0xff]  }
  0x76   :  { %1006 = vmatpush1.bf16.msra.mxu1 %v1952_v23  ;;  %964 = vmatprep.subr.bf16.mxu0 %v1957_v24  ;;  %v2045_v23 = vld [vmem:[#allocation8 + $0x30] ss:$8 sps:$4 sm:$0xff]   ;;  %v2050_v24 = vld [vmem:[#allocation8 + $0x24] ss:$8 sps:$4 sm:$0xff]  }
  0x77   :  { %1007 = vmatprep.subr.bf16.mxu1 %v1960_v25  ;;  %v2083_v25 = vld [vmem:[#allocation8 + $0x174] ss:$8 sps:$4 sm:$0xff]  }
  0x79   :  { %965 = vmatpush1.bf16.msra.mxu0 %v1955_v26  ;;  %v2048_v26 = vld [vmem:[#allocation8 + $0x20] ss:$8 sps:$4 sm:$0xff]  }
  0x7a   :  { %1008 = vmatpush1.bf16.msra.mxu1 %v1958_v27  ;;  %966 = vmatprep.subr.bf16.mxu0 %v1963_v28  ;;  %v2084_v27 = vld [vmem:[#allocation8 + $0x160] ss:$8 sps:$4 sm:$0xff]   ;;  %v2053_v28 = vld [vmem:[#allocation8 + $0x14] ss:$8 sps:$4 sm:$0xff]  }
  0x7b   :  { %1009 = vmatprep.subr.bf16.mxu1 %v1966_v29  ;;  %v2089_v29 = vld [vmem:[#allocation8 + $0x154] ss:$8 sps:$4 sm:$0xff]  }
  0x7d   :  { %967 = vmatpush1.bf16.msra.mxu0 %v1961_v30  ;;  %v2051_v30 = vld [vmem:[#allocation8 + $0x10] ss:$8 sps:$4 sm:$0xff]  }
  0x7e   :  { %1010 = vmatpush1.bf16.msra.mxu1 %v1964_v31  ;;  %968 = vmatprep.subr.bf16.mxu0 %v1969_v32  ;;  %v2087_v31 = vld [vmem:[#allocation8 + $0x150] ss:$8 sps:$4 sm:$0xff]   ;;  %v2056_v32 = vld [vmem:[#allocation8 + $0x4] ss:$8 sps:$4 sm:$0xff]  }
  0x7f   :  { %1011 = vmatprep.subr.bf16.mxu1 %v1972_v33  ;;  %v2092_v33 = vld [vmem:[#allocation8 + $0x144] ss:$8 sps:$4 sm:$0xff]  }
  0x81   :  { %969 = vmatpush1.bf16.msra.mxu0 %v1967_v34  ;;  %v2054_v34 = vld [vmem:[#allocation8] ss:$8 sps:$4 sm:$0xff]  }
  0x82   :  { %1012 = vmatpush1.bf16.msra.mxu1 %v1970_v35  ;;  %970 = vmatprep.subr.bf16.mxu0 %v1975_v36  ;;  %v2090_v35 = vld [vmem:[#allocation8 + $0x140] ss:$8 sps:$4 sm:$0xff]   ;;  %v2059_v36 = vld [vmem:[#allocation8 + $0xf4] ss:$8 sps:$4 sm:$0xff]  }
  0x83   :  { %1013 = vmatprep.subr.bf16.mxu1 %v1978_v37  ;;  %v2095_v37 = vld [vmem:[#allocation8 + $0x134] ss:$8 sps:$4 sm:$0xff]  }
  0x85   :  { %971 = vmatpush1.bf16.msra.mxu0 %v1973_v38  ;;  %v2057_v38 = vld [vmem:[#allocation8 + $0xf0] ss:$8 sps:$4 sm:$0xff]  }
  0x86   :  { %1014 = vmatpush1.bf16.msra.mxu1 %v1976_v39  ;;  %972 = vmatprep.subr.bf16.mxu0 %v1981_v40  ;;  %v2093_v39 = vld [vmem:[#allocation8 + $0x130] ss:$8 sps:$4 sm:$0xff]   ;;  %v2062_v40 = vld [vmem:[#allocation8 + $0xe4] ss:$8 sps:$4 sm:$0xff]  }
  0x87   :  { %1015 = vmatprep.subr.bf16.mxu1 %v1984_v41  ;;  %v2098_v41 = vld [vmem:[#allocation8 + $0x124] ss:$8 sps:$4 sm:$0xff]  }
  0x89   :  { %973 = vmatpush1.bf16.msra.mxu0 %v1979_v42  ;;  %v2060_v42 = vld [vmem:[#allocation8 + $0xe0] ss:$8 sps:$4 sm:$0xff]  }
  0x8a   :  { %1016 = vmatpush1.bf16.msra.mxu1 %v1982_v43  ;;  %974 = vmatprep.subr.bf16.mxu0 %v1987_v44  ;;  %v2096_v43 = vld [vmem:[#allocation8 + $0x120] ss:$8 sps:$4 sm:$0xff]   ;;  %v2065_v44 = vld [vmem:[#allocation8 + $0xd4] ss:$8 sps:$4 sm:$0xff]  }
  0x8b   :  { %1017 = vmatprep.subr.bf16.mxu1 %v1990_v45  ;;  %v2101_v45 = vld [vmem:[#allocation8 + $0x114] ss:$8 sps:$4 sm:$0xff]  }
  0x8d   :  { %975 = vmatpush2.bf16.msra.mxu0 %v1985_v46  ;;  %v2063_v46 = vld [vmem:[#allocation8 + $0xd0] ss:$8 sps:$4 sm:$0xff]  }
  0x8e   :  { %1018 = vmatpush2.bf16.msra.mxu1 %v1988_v47  ;;  %976 = vmatprep.subr.bf16.mxu0 %v1993_v48  ;;  %v2099_v47 = vld [vmem:[#allocation8 + $0x110] ss:$8 sps:$4 sm:$0xff]   ;;  %v2068_v48 = vld [vmem:[#allocation8 + $0xc4] ss:$8 sps:$4 sm:$0xff]  }
  0x8f   :  { %1019 = vmatprep.subr.bf16.mxu1 %v1996_v49  ;;  %v2104_v49 = vld [vmem:[#allocation8 + $0x104] ss:$8 sps:$4 sm:$0xff]  }
  0x91   :  { %977 = vmatpush2.bf16.msra.mxu0 %v1991_v50  ;;  %v2066_v50 = vld [vmem:[#allocation8 + $0xc0] ss:$8 sps:$4 sm:$0xff]  }
  0x92   :  { %1020 = vmatpush2.bf16.msra.mxu1 %v1994_v51  ;;  %978 = vmatprep.subr.bf16.mxu0 %v1999_v52  ;;  %v2102_v51 = vld [vmem:[#allocation8 + $0x100] ss:$8 sps:$4 sm:$0xff]   ;;  %v2071_v52 = vld [vmem:[#allocation8 + $0xb4] ss:$8 sps:$4 sm:$0xff]  }
  0x93   :  { %1021 = vmatprep.subr.bf16.mxu1 %v2002_v53  ;;  %v2107_v53 = vld [vmem:[#allocation8 + $0x1f4] ss:$8 sps:$4 sm:$0xff]  }
  0x95   :  { %979 = vmatpush2.bf16.msra.mxu0 %v1997_v54  ;;  %v2069_v54 = vld [vmem:[#allocation8 + $0xb0] ss:$8 sps:$4 sm:$0xff]  }
  0x96   :  { %1022 = vmatpush2.bf16.msra.mxu1 %v2000_v55  ;;  %980 = vmatprep.subr.bf16.mxu0 %v2005_v56  ;;  %v2105_v55 = vld [vmem:[#allocation8 + $0x1f0] ss:$8 sps:$4 sm:$0xff]   ;;  %v2074_v56 = vld [vmem:[#allocation8 + $0xa4] ss:$8 sps:$4 sm:$0xff]  }
  0x97   :  { %1023 = vmatprep.subr.bf16.mxu1 %v2008_v57  ;;  %v2110_v57 = vld [vmem:[#allocation8 + $0x1e4] ss:$8 sps:$4 sm:$0xff]  }
  0x99   :  { %981 = vmatpush2.bf16.msra.mxu0 %v2003_v58  ;;  %v2072_v58 = vld [vmem:[#allocation8 + $0xa0] ss:$8 sps:$4 sm:$0xff]  }
  0x9a   :  { %1024 = vmatpush2.bf16.msra.mxu1 %v2006_v59  ;;  %982 = vmatprep.subr.bf16.mxu0 %v2011_v60  ;;  %v2108_v59 = vld [vmem:[#allocation8 + $0x1e0] ss:$8 sps:$4 sm:$0xff]   ;;  %v2077_v60 = vld [vmem:[#allocation8 + $0x94] ss:$8 sps:$4 sm:$0xff]  }
  0x9b   :  { %1025 = vmatprep.subr.bf16.mxu1 %v2014_v61  ;;  %v2113_v61 = vld [vmem:[#allocation8 + $0x1d4] ss:$8 sps:$4 sm:$0xff]  }
  0x9d   :  { %983 = vmatpush2.bf16.msra.mxu0 %v2009_v62  ;;  %v2075_v62 = vld [vmem:[#allocation8 + $0x90] ss:$8 sps:$4 sm:$0xff]  }
  0x9e   :  { %1026 = vmatpush2.bf16.msra.mxu1 %v2012_v63  ;;  %984 = vmatprep.subr.bf16.mxu0 %v2017_v0  ;;  %v2111_v63 = vld [vmem:[#allocation8 + $0x1d0] ss:$8 sps:$4 sm:$0xff]   ;;  %v2080_v0 = vld [vmem:[#allocation8 + $0x84] ss:$8 sps:$4 sm:$0xff]  }
  0x9f   :  { %1027 = vmatprep.subr.bf16.mxu1 %v2020_v1  ;;  %v2116_v1 = vld [vmem:[#allocation8 + $0x1c4] ss:$8 sps:$4 sm:$0xff]  }
  0xa1   :  { %985 = vmatpush2.bf16.msra.mxu0 %v2015_v2  ;;  %v2078_v2 = vld [vmem:[#allocation8 + $0x80] ss:$8 sps:$4 sm:$0xff]  }
  0xa2   :  { %1028 = vmatpush2.bf16.msra.mxu1 %v2018_v3  ;;  %986 = vmatprep.subr.bf16.mxu0 %v2023_v4  ;;  %v2114_v3 = vld [vmem:[#allocation8 + $0x1c0] ss:$8 sps:$4 sm:$0xff]   ;;  %v2119_v4 = vld [vmem:[#allocation8 + $0x1b4] ss:$8 sps:$4 sm:$0xff]  }
  0xa3   :  { %1029 = vmatprep.subr.bf16.mxu1 %v2026_v5  ;;  %v2117_v5 = vld [vmem:[#allocation8 + $0x1b0] ss:$8 sps:$4 sm:$0xff]  }
  0xa5   :  { %987 = vmatpush2.bf16.msra.mxu0 %v2021_v6  ;;  %v2122_v6 = vld [vmem:[#allocation8 + $0x1a4] ss:$8 sps:$4 sm:$0xff]  }
  0xa6   :  { %1030 = vmatpush2.bf16.msra.mxu1 %v2024_v7  ;;  %988 = vmatprep.subr.bf16.mxu0 %v2029_v8  ;;  %v2120_v7 = vld [vmem:[#allocation8 + $0x1a0] ss:$8 sps:$4 sm:$0xff]   ;;  %v2125_v8 = vld [vmem:[#allocation8 + $0x194] ss:$8 sps:$4 sm:$0xff]  }
  0xa7   :  { %1031 = vmatprep.subr.bf16.mxu1 %v2032_v9  ;;  %v2123_v9 = vld [vmem:[#allocation8 + $0x190] ss:$8 sps:$4 sm:$0xff]  }
  0xa9   :  { %989 = vmatpush2.bf16.msra.mxu0 %v2027_v10  ;;  %v2128_v10 = vld [vmem:[#allocation8 + $0x184] ss:$8 sps:$4 sm:$0xff]  }
  0xaa   :  { %1032 = vmatpush2.bf16.msra.mxu1 %v2030_v11  ;;  %1452 = vmatprep.subr.bf16.mxu0 %v2035_v14  ;;  %v2126_v11 = vld [vmem:[#allocation8 + $0x180] ss:$8 sps:$4 sm:$0xff]   ;;  %v212_v14 = vlaneseq }
  0xab   :  { %1495 = vmatprep.subr.bf16.mxu1 %v2083_v25 }
  0xac   :  { %991 = vmatmul.mubr.bf16.vlgmr.msra.gmra.mxu0 %v2279_v12  ;;  %v2081_v12 = vld [vmem:[#allocation8 + $0x170] ss:$8 sps:$4 sm:$0xff]  }
  0xad   :  { %1034 = vmatmul.mubr.bf16.vlgmr.msra.gmra.mxu1 %v2281_v13  ;;  %1453 = vmatpush1.bf16.msra.mxu0 %v2033_v15  ;;  %v2086_v13 = vld [vmem:[#allocation8 + $0x164] ss:$8 sps:$4 sm:$0xff]   ;;  %v2287_v15 = vshrl.u32 %v212_v14, 7 }
  0xae   :  { %1454 = vmatprep.subr.bf16.mxu0 %v2038_v16  ;;  %1496 = vmatpush1.bf16.msra.mxu1 %v2081_v12 }
  0xaf   :  { %1497 = vmatprep.subr.bf16.mxu1 %v2086_v13  ;;  %v218_v16 = vsub.s32 1, %v2287_v15 }
  0xb1   :  { %1455 = vmatpush1.bf16.msra.mxu0 %v2036_v17  ;;  %v210_v17 = vld [vmem:[%s2319_s2] sm:$0xf] }
  0xb2   :  { %1456 = vmatprep.subr.bf16.mxu0 %v2041_v18  ;;  %1498 = vmatpush1.bf16.msra.mxu1 %v2084_v27  ;;  %v214_v18 = vsub.s32 0, %v2287_v15 }
  0xb3   :  { %1499 = vmatprep.subr.bf16.mxu1 %v2089_v29 }
  0xb5   :  { %1457 = vmatpush1.bf16.msra.mxu0 %v2039_v19  ;;  %v219_v19 = vrot.slane %v210_v17, %v218_v16 }
  0xb6   :  { %1458 = vmatprep.subr.bf16.mxu0 %v2044_v20  ;;  %1500 = vmatpush1.bf16.msra.mxu1 %v2087_v31  ;;  %v215_v20 = vrot.slane %v210_v17, %v214_v18 }
  0xb7   :  { %1501 = vmatprep.subr.bf16.mxu1 %v2092_v33 }
  0xb9   :  { %1459 = vmatpush1.bf16.msra.mxu0 %v2042_v21 }
  0xba   :  { %1460 = vmatprep.subr.bf16.mxu0 %v2047_v22  ;;  %1502 = vmatpush1.bf16.msra.mxu1 %v2090_v35 }
  0xbb   :  { %1503 = vmatprep.subr.bf16.mxu1 %v2095_v37 }
  0xbd   :  { %1461 = vmatpush1.bf16.msra.mxu0 %v2045_v23 }
  0xbe   :  { %1462 = vmatprep.subr.bf16.mxu0 %v2050_v24  ;;  %1504 = vmatpush1.bf16.msra.mxu1 %v2093_v39 }
  0xbf   :  { %1505 = vmatprep.subr.bf16.mxu1 %v2098_v41  ;;  %v226_v41 = vsub.s32 3, %v2287_v15 }
  0xc1   :  { %1463 = vmatpush1.bf16.msra.mxu0 %v2048_v26 }
  0xc2   :  { %1464 = vmatprep.subr.bf16.mxu0 %v2053_v28  ;;  %1506 = vmatpush1.bf16.msra.mxu1 %v2096_v43  ;;  %v227_v43 = vrot.slane %v210_v17, %v226_v41 }
  0xc3   :  { %1507 = vmatprep.subr.bf16.mxu1 %v2101_v45 }
  0xc5   :  { %1465 = vmatpush1.bf16.msra.mxu0 %v2051_v30 }
  0xc6   :  { %1466 = vmatprep.subr.bf16.mxu0 %v2056_v32  ;;  %1508 = vmatpush1.bf16.msra.mxu1 %v2099_v47 }
  0xc7   :  { %1509 = vmatprep.subr.bf16.mxu1 %v2104_v49 }
  0xc9   :  { %1467 = vmatpush1.bf16.msra.mxu0 %v2054_v34 }
  0xca   :  { %1468 = vmatprep.subr.bf16.mxu0 %v2059_v36  ;;  %1510 = vmatpush1.bf16.msra.mxu1 %v2102_v51 }
  0xcb   :  { %1511 = vmatprep.subr.bf16.mxu1 %v2107_v53 }
  0xcd   :  { %1469 = vmatpush2.bf16.msra.mxu0 %v2057_v38 }
  0xce   :  { %1470 = vmatprep.subr.bf16.mxu0 %v2062_v40  ;;  %1512 = vmatpush2.bf16.msra.mxu1 %v2105_v55 }
  0xcf   :  { %1513 = vmatprep.subr.bf16.mxu1 %v2110_v57 }
  0xd1   :  { %1471 = vmatpush2.bf16.msra.mxu0 %v2060_v42  ;;  %v222_v42 = vsub.s32 2, %v2287_v15 }
  0xd2   :  { %1472 = vmatprep.subr.bf16.mxu0 %v2065_v44  ;;  %1514 = vmatpush2.bf16.msra.mxu1 %v2108_v59 }
  0xd3   :  { %1515 = vmatprep.subr.bf16.mxu1 %v2113_v61  ;;  %v223_v44 = vrot.slane %v210_v17, %v222_v42  ;;  %v1120_v17 = vld [vmem:[%s2321_s4] sm:$0x3] }
  0xd5   :  { %1473 = vmatpush2.bf16.msra.mxu0 %v2063_v46 }
  0xd6   :  { %1474 = vmatprep.subr.bf16.mxu0 %v2068_v48  ;;  %1516 = vmatpush2.bf16.msra.mxu1 %v2111_v63 }
  0xd7   :  { %1517 = vmatprep.subr.bf16.mxu1 %v2116_v1 }
  0xd9   :  { %1475 = vmatpush2.bf16.msra.mxu0 %v2066_v50 }
  0xda   :  { %1476 = vmatprep.subr.bf16.mxu0 %v2071_v52  ;;  %1518 = vmatpush2.bf16.msra.mxu1 %v2114_v3  ;;  %v2228_v3 = vmov 1966171168  }
  0xdb   :  { %1519 = vmatprep.subr.bf16.mxu1 %v2119_v4  ;;  %v1557_v4 = vunpack.c.l.s4 %v2228_v3 }
  0xdd   :  { %1477 = vmatpush2.bf16.msra.mxu0 %v2069_v54 }
  0xde   :  { %1478 = vmatprep.subr.bf16.mxu0 %v2074_v56  ;;  %1520 = vmatpush2.bf16.msra.mxu1 %v2117_v5  ;;  %v1828_v5 = vld.sshfl [vmem:[%s2322_s5] sm:$0x11 pattern:$0x75316420] }
  0xdf   :  { %1521 = vmatprep.subr.bf16.mxu1 %v2122_v6  ;;  %v1558_v6 = vunpack.c.0.s8 %v1557_v4 }
  0xe1   :  { %1479 = vmatpush2.bf16.msra.mxu0 %v2072_v58 }
  0xe2   :  { %1480 = vmatprep.subr.bf16.mxu0 %v2077_v60  ;;  %1522 = vmatpush2.bf16.msra.mxu1 %v2120_v7  ;;  %v1555_v7 = vcombine.high %v1828_v5, %v1828_v5 }
  0xe3   :  { %1523 = vmatprep.subr.bf16.mxu1 %v2125_v8  ;;  %v1561_v8 = vsub.s32 %v1558_v6, %v2287_v15 }
  0xe5   :  { %1481 = vmatpush2.bf16.msra.mxu0 %v2075_v62 }
  0xe6   :  { %1482 = vmatprep.subr.bf16.mxu0 %v2080_v0  ;;  %1524 = vmatpush2.bf16.msra.mxu1 %v2123_v9  ;;  %v1569_v9 = vrot.slane %v1555_v7, %v1561_v8 }
  0xe7   :  { %1525 = vmatprep.subr.bf16.mxu1 %v2128_v10  ;;  %v1562_v10 = vrot.slane %v1828_v5, %v1561_v8 }
  0xe9   :  { %1483 = vmatpush2.bf16.msra.mxu0 %v2078_v2 }
  0xea   :  { %1526 = vmatpush2.bf16.msra.mxu1 %v2126_v11 }
 0x12c   :  { %v906_v21 = vpop.f32.mrf.mxu0 }
 0x12d   :  { %v949_v22 = vpop.f32.mrf.mxu1  ;;  %v907_v12 = vadd.f32 %v906_v21, %v215_v20  ;;  %v1125_v21 = vrot.slane %v1120_v17, %v214_v18  ;;  %v1546_v18 = vstv %s2323_s6 }
 0x12e   :  { %v908_v23 = vpop.f32.mrf.mxu0 }
 0x12f   :  { %v951_v24 = vpop.f32.mrf.mxu1  ;;  %v909_v25 = vadd.f32 %v908_v23, %v219_v19  ;;  %v950_v32 = vadd.f32 %v949_v22, %v907_v12 }
 0x130   :  { %v910_v13 = vpop.f32.mrf.mxu0 }
 0x131   :  { %v953_v26 = vpop.f32.mrf.mxu1  ;;  %v911_v27 = vadd.f32 %v910_v13, %v215_v20  ;;  %v952_v29 = vadd.f32 %v951_v24, %v909_v25  ;;  %v1044_v38 = vmax.f32 %v950_v32, 0.0  ;;  %v1129_v20 = vrot.slane %v1120_v17, %v218_v16 }
 0x132   :  { %v912_v28 = vpop.f32.mrf.mxu0 }
 0x133   :  { %v954_v30 = vadd.f32 %v953_v26, %v911_v27  ;;  %v913_v31 = vadd.f32 %v912_v28, %v219_v19  ;;  %v955_v33 = vpop.f32.mrf.mxu1  ;;  %v1045_v36 = vmax.f32 %v952_v29, 0.0 }
 0x135   :  { %v956_v34 = vadd.f32 %v955_v33, %v913_v31  ;;  %v1048_v35 = vmax.f32 %v954_v30, 0.0 }
 0x137   :  { %v1049_v37 = vmax.f32 %v956_v34, 0.0  ;;  %v1052_v40 = vpack.c.bf16 %v1048_v35, %v1044_v38 }
 0x139   :  { %v1053_v39 = vpack.c.bf16 %v1049_v37, %v1045_v36 }
 0x13b   :  { %1484 = vmatprep.mubr.bf16.mxu0 %v1053_v39 }
 0x13c   :  { %1485 = vmatmul.mubr.bf16.vlgmr.msra.gmra.mxu0 %v1052_v40 }
 0x13d   :  { %1604 = vmatprep.mubr.bf16.mxu0 %v1569_v9 }
 0x16c   :  { %v992_v45 = vpop.f32.mrf.mxu0 }
 0x16d   :  { %v1035_v46 = vpop.f32.mrf.mxu1  ;;  %v993_v50 = vadd.f32 %v992_v45, %v223_v44 }
 0x16e   :  { %v994_v47 = vpop.f32.mrf.mxu0 }
 0x16f   :  { %v1037_v48 = vpop.f32.mrf.mxu1  ;;  %v995_v49 = vadd.f32 %v994_v47, %v227_v43  ;;  %v1036_v58 = vadd.f32 %v1035_v46, %v993_v50 }
 0x170   :  { %v996_v51 = vpop.f32.mrf.mxu0 }
 0x171   :  { %v1039_v52 = vpop.f32.mrf.mxu1  ;;  %v997_v53 = vadd.f32 %v996_v51, %v223_v44  ;;  %v1038_v55 = vadd.f32 %v1037_v48, %v995_v49  ;;  %v1046_v0 = vmax.f32 %v1036_v58, 0.0 }
 0x172   :  { %v998_v54 = vpop.f32.mrf.mxu0 }
 0x173   :  { %v1040_v56 = vadd.f32 %v1039_v52, %v997_v53  ;;  %v999_v57 = vadd.f32 %v998_v54, %v227_v43  ;;  %v1041_v59 = vpop.f32.mrf.mxu1  ;;  %v1047_v62 = vmax.f32 %v1038_v55, 0.0 }
 0x175   :  { %v1042_v60 = vadd.f32 %v1041_v59, %v999_v57  ;;  %v1050_v61 = vmax.f32 %v1040_v56, 0.0 }
 0x177   :  { %v1051_v63 = vmax.f32 %v1042_v60, 0.0  ;;  %v1054_v2 = vpack.c.bf16 %v1050_v61, %v1046_v0 }
 0x179   :  { %v1055_v1 = vpack.c.bf16 %v1051_v63, %v1047_v62 }
 0x17b   :  { %1527 = vmatprep.mubr.bf16.mxu1 %v1055_v1 }
 0x17c   :  { %1528 = vmatmul.mubr.bf16.vlgmr.msra.gmra.mxu1 %v1054_v2 }
 0x1fc   :  { %v1486_v11 = vpop.f32.mrf.mxu0 }
 0x1fd   :  { %v1487_v13 = vadd.f32 %v1486_v11, %v1125_v21 }
 0x1fe   :  { %v1488_v14 = vpop.f32.mrf.mxu0 }
 0x1ff   :  { %v1489_v25 = vadd.f32 %v1488_v14, %v1129_v20 }
 0x200   :  { %v1490_v19 = vpop.f32.mrf.mxu0 }
 0x201   :  { %v1491_v12 = vadd.f32 %v1490_v19, %v1125_v21 }
 0x202   :  { %v1492_v23 = vpop.f32.mrf.mxu0 }
 0x203   :  { %v1493_v27 = vadd.f32 %v1492_v23, %v1129_v20 }
 0x23c   :  { %v1529_v22 = vpop.f32.mrf.mxu1 }
 0x23d   :  { %v1530_v30 = vadd.f32 %v1529_v22, %v1487_v13 }
 0x23e   :  { %v1531_v24 = vpop.f32.mrf.mxu1 }
 0x23f   :  { %v1532_v28 = vadd.f32 %v1531_v24, %v1489_v25  ;;  %v1538_v16 = vmax.f32 %v1530_v30, 0.0 }
 0x240   :  { %v1533_v26 = vpop.f32.mrf.mxu1 }
 0x241   :  { %v1534_v29 = vadd.f32 %v1533_v26, %v1491_v12  ;;  %v1539_v34 = vmax.f32 %v1532_v28, 0.0 }
 0x242   :  { %v1535_v31 = vpop.f32.mrf.mxu1 }
 0x243   :  { %v1536_v32 = vadd.f32 %v1535_v31, %v1493_v27  ;;  %v1540_v33 = vmax.f32 %v1534_v29, 0.0 }
 0x245   :  { %v1541_v35 = vmax.f32 %v1536_v32, 0.0  ;;  %v1542_v15 = vpack.c.bf16 %v1540_v33, %v1538_v16 }
 0x247   :  { %v1543_v36 = vpack.c.bf16 %v1541_v35, %v1539_v34 }
 0x249   :  { %1586 = vmatprep.subr.bf16.mxu0 %v1543_v36 }
 0x24a   :  { %1587 = vmatpush1.bf16.xpose.msra.mxu0 %v1542_v15 }
 0x251   :  { %1605 = vmatmul.mubr.bf16.vlgmr.msra.gmra.mxu0 %v1562_v10 }
 0x311   :  { %v1606_v37 = vpop.f32.mrf.mxu0 }
 0x312   :  { %v1607_v38 = vadd.f32 %v1606_v37, %v1546_v18 }
 0x313   :  { %v1608_v39 = vpop.f32.mrf.mxu0 }
 0x314   :  { %v1829_v40 = vmul.f32 -1.442695, %v1607_v38 }
 0x315   :  { %v1609_v41 = vpop.f32.mrf.mxu0 }
 0x316   :  { %2129 = vpow2.f32 %v1829_v40 }
 0x317   :  { %v1610_v42 = vpop.f32.mrf.mxu0 }
 0x323   :  { %v2130_v43 = vpop.eup %2129 }
 0x324   :  { %v1615_v44 = vadd.f32 1.0, %v2130_v43 }
 0x326   :  { %2131 = vrcp.f32 %v1615_v44 }
 0x333   :  { %v2132_v45 = vpop.eup %2131 }
 0x334   :  { %1619 = vst.msk [vmem:[#allocation9] sm:$0x1] %vm1618_vm0, %v2132_v45 }
 0x335   :  { %2204 = shalt.err (!%p2201_p5)
}
 0x336   :  { %1629 = dma.vmem_to_hbm [thread:$0]  %s1627_s26, 16, %s2324_s7, [#allocation5]  }
 0x337   :  { %2217 = dma.done.wait [#allocation5], 16  }
 0x338   :  { %2218 = vsyncadd [#allocation5], 4294967280 }
 0x339   :  { %1633 = vsyncpa [#allocation4], 1 }
 0x33a   :  { %1634 = vsyncpa [#allocation7], 1 }
 0x33b   :  { %1635 = vsyncpa [#allocation5], 1 }

</bundles_post_ra>
